<compile_context>
chip_gen: v7x
topology: tpu7x:2x2x1
jax: 0.10.0
libtpu: 0.0.40
codegen_flags: <defaults>
</compile_context>

<pallas_src>
import functools

import jax
import jax.numpy as jnp
from jax.experimental import pallas as pl
from jax.experimental.pallas import tpu as pltpu


def _exclusive_cumprod_sublane(x):
    """Exclusive cumulative product along axis 0 (the sublane axis).

    Hillis-Steele scan in product space: ceil(log2(K-1)) full-width (K-1, TR)
    multiplies instead of K-1 single-sublane slice ops + a (K-1)-way concat.
    Shifted-in elements are 1 (the multiplicative identity).
    """
    k = x.shape[0]
    tail = x.shape[1:]
    if k == 1:
        return jnp.ones_like(x)
    # y[0] = 1, y[i] = x[i-1]; inclusive scan of y == exclusive scan of x.
    y = jnp.concatenate([jnp.ones((1,) + tail, x.dtype), x[:-1]], axis=0)
    step = 1
    while step < k:
        shifted = jnp.concatenate(
            [jnp.ones((step,) + tail, x.dtype), y[:-step]], axis=0)
        y = y * shifted
        step *= 2
    return y


def _integrator_kernel(rgbs_ref, sigmas_ref, depths_ref,
                       rgbd_ref, weights_ref, dminmax_ref):
    """One tile of rays (lane axis); full integration along K (sublane axis)."""
    d = depths_ref[...].astype(jnp.float32)      # (K, TR)
    s = sigmas_ref[...].astype(jnp.float32)      # (K, TR)
    rgb = rgbs_ref[...].astype(jnp.float32)      # (3, K, TR)

    # deltas between consecutive samples along the ray.
    deltas = d[1:, :] - d[:-1, :]                        # (K-1, TR)

    # use_mid_point=True: midpoint values.
    rgb_mid = (rgb[:, :-1, :] + rgb[:, 1:, :]) * 0.5     # (3, K-1, TR)
    sig_mid = (s[:-1, :] + s[1:, :]) * 0.5               # (K-1, TR)
    dep_mid = (d[:-1, :] + d[1:, :]) * 0.5               # (K-1, TR)

    # clamp_mode='mipnerf': softplus(sigma - 1)
    sig_act = jax.nn.softplus(sig_mid - 1.0)

    alphas = 1.0 - jnp.exp(-deltas * sig_act)            # (K-1, TR)
    trans = 1.0 - alphas + 1e-10

    # weights[i] = alphas[i] * prod_{j<i} trans[j]  (vectorized scan).
    weights = alphas * _exclusive_cumprod_sublane(trans)  # (K-1, TR)
    weights_ref[...] = weights.astype(weights_ref.dtype)

    wsum = jnp.sum(weights, axis=0, keepdims=True)                 # (1, TR)
    crgb = jnp.sum(weights[None, :, :] * rgb_mid, axis=1)          # (3, TR)
    # normalize_depth=True. 0/0 -> NaN for empty rays, matching the reference;
    # the wrapper maps NaN -> inf and clips (clip_depth=True).
    cdep = jnp.sum(weights * dep_mid, axis=0, keepdims=True) / wsum  # (1, TR)

    # Fused (4, TR) output slab: rows 0..2 = composite rgb (*2-1), row 3 = depth.
    rgbd_ref[...] = jnp.concatenate(
        [crgb * 2.0 - 1.0, cdep], axis=0).astype(rgbd_ref.dtype)

    # Per-lane min/max of midpoint depths (for clip_depth): cheap XLU sublane
    # reductions; the wrapper reduces the (2, NR) slab to two scalars.
    dminmax_ref[...] = jnp.concatenate(
        [jnp.min(dep_mid, axis=0, keepdims=True),
         jnp.max(dep_mid, axis=0, keepdims=True)],
        axis=0).astype(dminmax_ref.dtype)


def _pick_tile(nr, requested):
    """Lane-multiple tile, capped by NR; keep >=2 grid steps when possible."""
    t = min(int(requested), pl.cdiv(nr, 128) * 128)
    t = max(128, (t // 128) * 128)
    # Keep at least 2 grid steps so dimension_semantics=("parallel",) can
    # shard the ray axis across the 2 TensorCores on v7x.
    if nr > 128 and pl.cdiv(nr, t) < 2:
        t = max(128, pl.cdiv(pl.cdiv(nr, 2), 128) * 128)
    return t


@functools.partial(jax.jit, static_argnames=("tile_r",))
def integrator_forward_native(rgbs_ckr, sigmas_kr, depths_kr, tile_r=1024):
    """Lane-major entry point (preferred: no HBM transpose passes).

    Args:
      rgbs_ckr:  (3, K, NR) float   (f32 or bf16; math is done in f32)
      sigmas_kr: (K, NR) float
      depths_kr: (K, NR) float
    Returns:
      crgb (3, NR), cdep (1, NR), weights (K-1, NR), all float32.
    """
    C, K, NR = rgbs_ckr.shape
    km1 = K - 1

    tile = _pick_tile(NR, tile_r)
    num_tiles = pl.cdiv(NR, tile)
    NR_pad = num_tiles * tile
    if NR_pad != NR:
        pad = ((0, 0), (0, NR_pad - NR))
        rgbs_p = jnp.pad(rgbs_ckr, ((0, 0),) + pad)
        sigmas_p = jnp.pad(sigmas_kr, pad)
        # Edge-pad depths so the in-kernel global min/max over midpoint depths
        # is not corrupted by padded lanes.
        depths_p = jnp.pad(depths_kr, pad, mode="edge")
    else:
        rgbs_p, sigmas_p, depths_p = rgbs_ckr, sigmas_kr, depths_kr

    rgbd, weights, dminmax = pl.pallas_call(
        _integrator_kernel,
        grid=(num_tiles,),
        in_specs=[
            pl.BlockSpec((C, K, tile), lambda i: (0, 0, i)),   # rgbs
            pl.BlockSpec((K, tile), lambda i: (0, i)),         # sigmas
            pl.BlockSpec((K, tile), lambda i: (0, i)),         # depths
        ],
        out_specs=[
            pl.BlockSpec((4, tile), lambda i: (0, i)),         # rgb(3)+depth(1)
            pl.BlockSpec((km1, tile), lambda i: (0, i)),       # weights
            pl.BlockSpec((2, tile), lambda i: (0, i)),         # depth min/max
        ],
        out_shape=[
            jax.ShapeDtypeStruct((4, NR_pad), jnp.float32),
            jax.ShapeDtypeStruct((km1, NR_pad), jnp.float32),
            jax.ShapeDtypeStruct((2, NR_pad), jnp.float32),
        ],
        compiler_params=pltpu.CompilerParams(
            dimension_semantics=("parallel",)),
    )(rgbs_p, sigmas_p, depths_p)

    rgbd = rgbd[:, :NR]
    weights = weights[:, :NR]
    crgb = rgbd[:3]
    cdep = rgbd[3:4]

    # clip_depth=True: NaN (empty rays) -> inf, then clip to the global
    # [min, max] of the midpoint depths.  The min/max were reduced per-lane
    # inside the kernel; this final reduction + clip is O(NR), negligible.
    dmin = jnp.min(dminmax[0])
    dmax = jnp.max(dminmax[1])
    cdep = jnp.clip(jnp.where(jnp.isnan(cdep), jnp.inf, cdep), dmin, dmax)
    return crgb, cdep, weights


@functools.partial(jax.jit, static_argnames=("tile_r",))
def integrator_forward(rgbs, sigmas, depths, tile_r=1024):
    """Torch-layout entry: rgbs [N,R,K,3], sigmas/depths [N,R,K,1]."""
    N, R, K, _ = rgbs.shape
    NR = N * R

    # --- layout glue (extra HBM passes). For this memory-bound op the permutes
    # roughly double HBM traffic; keep activations in the lane-major
    # (3,K,NR)/(K,NR) layout across the surrounding model and call
    # integrator_forward_native directly to avoid them. ---
    rgbs_t = jnp.transpose(rgbs.reshape(NR, K, 3), (2, 1, 0))      # (3, K, NR)
    sigmas_t = jnp.transpose(sigmas.reshape(NR, K), (1, 0))        # (K, NR)
    depths_t = jnp.transpose(depths.reshape(NR, K), (1, 0))        # (K, NR)

    crgb, cdep, weights = integrator_forward_native(
        rgbs_t, sigmas_t, depths_t, tile_r=tile_r)

    composite_rgb = jnp.transpose(crgb, (1, 0)).reshape(N, R, 3)
    composite_depth = jnp.transpose(cdep, (1, 0)).reshape(N, R, 1)
    weights_out = jnp.transpose(weights, (1, 0)).reshape(N, R, K - 1, 1)
    return {
        "composite_rgb": composite_rgb,
        "composite_depth": composite_depth,
        "weights": weights_out,
    }


def integrator_reference(rgbs, sigmas, depths):
    """Pure-JAX reference mirroring the PyTorch module with default options."""
    deltas = depths[:, :, 1:] - depths[:, :, :-1]
    rgbs_m = (rgbs[:, :, :-1] + rgbs[:, :, 1:]) / 2
    sigmas_m = (sigmas[:, :, :-1] + sigmas[:, :, 1:]) / 2
    depths_m = (depths[:, :, :-1] + depths[:, :, 1:]) / 2
    sigmas_a = jax.nn.softplus(sigmas_m - 1)
    alphas = 1 - jnp.exp(-deltas * sigmas_a)
    alphas_shifted = jnp.concatenate(
        [jnp.ones_like(alphas[:, :, :1]), 1 - alphas + 1e-10], axis=-2)
    weights = alphas * jnp.cumprod(alphas_shifted, axis=-2)[:, :, :-1]
    weights_sum = weights.sum(2)
    composite_rgb = jnp.sum(weights * rgbs_m, axis=-2)
    composite_depth = jnp.sum(weights * depths_m, axis=-2) / weights_sum
    composite_depth = jnp.where(jnp.isnan(composite_depth), jnp.inf,
                                composite_depth)
    composite_depth = jnp.clip(composite_depth, jnp.min(depths_m),
                               jnp.max(depths_m))
    composite_rgb = composite_rgb * 2 - 1
    return {
        "composite_rgb": composite_rgb,
        "composite_depth": composite_depth,
        "weights": weights,
    }


if __name__ == "__main__":
    def make_inputs(key, N, R, K):
        k1, k2, k3 = jax.random.split(key, 3)
        rgbs = jax.random.uniform(k1, (N, R, K, 3), dtype=jnp.float32)
        sigmas = jax.random.normal(k2, (N, R, K, 1), dtype=jnp.float32)
        base = jax.random.uniform(k3, (N, R, K, 1), dtype=jnp.float32) * 0.5 + 0.1
        depths = jnp.cumsum(base, axis=2)   # monotonically increasing depths
        return rgbs, sigmas, depths

    key = jax.random.PRNGKey(0)
    # Case 1: NR = 256 (lane-multiple). Case 2: NR = 192 (exercises padding).
    # Case 3: NR = 200, K = 12 (padding + non-multiple-of-8 weights rows).
    for (N, R, K) in ((2, 128, 8), (2, 96, 8), (1, 200, 12)):
        rgbs, sigmas, depths = make_inputs(key, N, R, K)
        out = integrator_forward(rgbs, sigmas, depths)
        jax.block_until_ready(out)

        ref = integrator_reference(rgbs, sigmas, depths)
        for name in ("composite_rgb", "composite_depth", "weights"):
            assert out[name].shape == ref[name].shape, (name, N, R, K)
            assert jnp.allclose(out[name], ref[name], atol=1e-5, rtol=1e-5), (
                name, N, R, K)

    print("KERNEL_OK")
</pallas_src>

<mosaic_0001>
module attributes {stable_mosaic.version = 11 : i64} {
  func.func @_integrator_kernel(%arg0: i32, %arg1: memref<3x8x128xf32, #tpu.memory_space<vmem>>, %arg2: memref<8x128xf32, #tpu.memory_space<vmem>>, %arg3: memref<8x128xf32, #tpu.memory_space<vmem>>, %arg4: memref<4x128xf32, #tpu.memory_space<vmem>>, %arg5: memref<7x128xf32, #tpu.memory_space<vmem>>, %arg6: memref<2x128xf32, #tpu.memory_space<vmem>>) attributes {dimension_semantics = [#tpu.dimension_semantics<parallel>], iteration_bounds = array<i64: 2>, scalar_prefetch = 0 : i64, scratch_operands = 0 : i64, tpu.core_type = #tpu.core_type<tc>, window_params = [{transform_indices = @transform_0, window_bounds = array<i64: 3, 8, 128>}, {transform_indices = @transform_1, window_bounds = array<i64: 8, 128>}, {transform_indices = @transform_2, window_bounds = array<i64: 8, 128>}, {transform_indices = @transform_3, window_bounds = array<i64: 4, 128>}, {transform_indices = @transform_4, window_bounds = array<i64: 7, 128>}, {transform_indices = @transform_5, window_bounds = array<i64: 2, 128>}]} {
    %c0 = arith.constant 0 : index
    %c0_0 = arith.constant 0 : index
    %0 = vector.load %arg3[%c0, %c0_0] : memref<8x128xf32, #tpu.memory_space<vmem>>, vector<8x128xf32>
    %c0_1 = arith.constant 0 : index
    %c0_2 = arith.constant 0 : index
    %1 = vector.load %arg2[%c0_1, %c0_2] : memref<8x128xf32, #tpu.memory_space<vmem>>, vector<8x128xf32>
    %c0_3 = arith.constant 0 : index
    %c0_4 = arith.constant 0 : index
    %c0_5 = arith.constant 0 : index
    %2 = vector.load %arg1[%c0_3, %c0_4, %c0_5] : memref<3x8x128xf32, #tpu.memory_space<vmem>>, vector<3x8x128xf32>
    %3 = vector.extract_strided_slice %0 {offsets = [1, 0], sizes = [7, 128], strides = [1, 1]} : vector<8x128xf32> to vector<7x128xf32>
    %4 = vector.extract_strided_slice %0 {offsets = [0, 0], sizes = [7, 128], strides = [1, 1]} : vector<8x128xf32> to vector<7x128xf32>
    %5 = arith.subf %3, %4 : vector<7x128xf32>
    %6 = vector.extract_strided_slice %2 {offsets = [0, 0, 0], sizes = [3, 7, 128], strides = [1, 1, 1]} : vector<3x8x128xf32> to vector<3x7x128xf32>
    %7 = vector.extract_strided_slice %2 {offsets = [0, 1, 0], sizes = [3, 7, 128], strides = [1, 1, 1]} : vector<3x8x128xf32> to vector<3x7x128xf32>
    %8 = arith.addf %6, %7 : vector<3x7x128xf32>
    %cst = arith.constant 5.000000e-01 : f32
    %9 = vector.broadcast %cst : f32 to vector<3x7x128xf32>
    %10 = arith.mulf %8, %9 : vector<3x7x128xf32>
    %11 = vector.extract_strided_slice %1 {offsets = [0, 0], sizes = [7, 128], strides = [1, 1]} : vector<8x128xf32> to vector<7x128xf32>
    %12 = vector.extract_strided_slice %1 {offsets = [1, 0], sizes = [7, 128], strides = [1, 1]} : vector<8x128xf32> to vector<7x128xf32>
    %13 = arith.addf %11, %12 : vector<7x128xf32>
    %cst_6 = arith.constant 5.000000e-01 : f32
    %14 = vector.broadcast %cst_6 : f32 to vector<7x128xf32>
    %15 = arith.mulf %13, %14 : vector<7x128xf32>
    %16 = vector.extract_strided_slice %0 {offsets = [0, 0], sizes = [7, 128], strides = [1, 1]} : vector<8x128xf32> to vector<7x128xf32>
    %17 = vector.extract_strided_slice %0 {offsets = [1, 0], sizes = [7, 128], strides = [1, 1]} : vector<8x128xf32> to vector<7x128xf32>
    %18 = arith.addf %16, %17 : vector<7x128xf32>
    %cst_7 = arith.constant 5.000000e-01 : f32
    %19 = vector.broadcast %cst_7 : f32 to vector<7x128xf32>
    %20 = arith.mulf %18, %19 : vector<7x128xf32>
    %cst_8 = arith.constant 1.000000e+00 : f32
    %21 = vector.broadcast %cst_8 : f32 to vector<7x128xf32>
    %22 = arith.subf %15, %21 : vector<7x128xf32>
    %cst_9 = arith.constant 0.000000e+00 : f32
    %23 = vector.broadcast %cst_9 : f32 to vector<7x128xf32>
    %24 = arith.maximumf %22, %23 : vector<7x128xf32>
    %25 = vector.broadcast %cst_9 : f32 to vector<7x128xf32>
    %26 = arith.subf %22, %25 : vector<7x128xf32>
    %27 = arith.cmpf one, %26, %26 : vector<7x128xf32>
    %28 = vector.broadcast %cst_9 : f32 to vector<7x128xf32>
    %29 = arith.addf %22, %28 : vector<7x128xf32>
    %30 = math.absf %26 : vector<7x128xf32>
    %cst_10 = arith.constant 0.000000e+00 : f32
    %31 = vector.broadcast %cst_10 : f32 to vector<7x128xf32>
    %32 = arith.subf %31, %30 : vector<7x128xf32>
    %33 = math.exp %32 : vector<7x128xf32>
    %34 = math.log1p %33 : vector<7x128xf32>
    %35 = arith.addf %24, %34 : vector<7x128xf32>
    %36 = arith.select %27, %29, %35 : vector<7x128xi1>, vector<7x128xf32>
    %cst_11 = arith.constant 0.000000e+00 : f32
    %37 = vector.broadcast %cst_11 : f32 to vector<7x128xf32>
    %38 = arith.subf %37, %5 : vector<7x128xf32>
    %39 = arith.mulf %38, %36 : vector<7x128xf32>
    %40 = math.exp %39 : vector<7x128xf32>
    %cst_12 = arith.constant 1.000000e+00 : f32
    %41 = vector.broadcast %cst_12 : f32 to vector<7x128xf32>
    %42 = arith.subf %41, %40 : vector<7x128xf32>
    %cst_13 = arith.constant 1.000000e+00 : f32
    %43 = vector.broadcast %cst_13 : f32 to vector<7x128xf32>
    %44 = arith.subf %43, %42 : vector<7x128xf32>
    %cst_14 = arith.constant 1.000000e-10 : f32
    %45 = vector.broadcast %cst_14 : f32 to vector<7x128xf32>
    %46 = arith.addf %44, %45 : vector<7x128xf32>
    %cst_15 = arith.constant 1.000000e+00 : f32
    %47 = vector.broadcast %cst_15 : f32 to vector<1x128xf32>
    %48 = vector.extract_strided_slice %46 {offsets = [0, 0], sizes = [6, 128], strides = [1, 1]} : vector<7x128xf32> to vector<6x128xf32>
    %49 = tpu.concatenate %47, %48 in 0 : vector<1x128xf32>, vector<6x128xf32> -> vector<7x128xf32>
    %cst_16 = arith.constant 1.000000e+00 : f32
    %50 = vector.broadcast %cst_16 : f32 to vector<1x128xf32>
    %51 = vector.extract_strided_slice %49 {offsets = [0, 0], sizes = [6, 128], strides = [1, 1]} : vector<7x128xf32> to vector<6x128xf32>
    %52 = tpu.concatenate %50, %51 in 0 : vector<1x128xf32>, vector<6x128xf32> -> vector<7x128xf32>
    %53 = arith.mulf %49, %52 : vector<7x128xf32>
    %cst_17 = arith.constant 1.000000e+00 : f32
    %54 = vector.broadcast %cst_17 : f32 to vector<2x128xf32>
    %55 = vector.extract_strided_slice %53 {offsets = [0, 0], sizes = [5, 128], strides = [1, 1]} : vector<7x128xf32> to vector<5x128xf32>
    %56 = tpu.concatenate %54, %55 in 0 : vector<2x128xf32>, vector<5x128xf32> -> vector<7x128xf32>
    %57 = arith.mulf %53, %56 : vector<7x128xf32>
    %cst_18 = arith.constant 1.000000e+00 : f32
    %58 = vector.broadcast %cst_18 : f32 to vector<4x128xf32>
    %59 = vector.extract_strided_slice %57 {offsets = [0, 0], sizes = [3, 128], strides = [1, 1]} : vector<7x128xf32> to vector<3x128xf32>
    %60 = tpu.concatenate %58, %59 in 0 : vector<4x128xf32>, vector<3x128xf32> -> vector<7x128xf32>
    %61 = arith.mulf %57, %60 : vector<7x128xf32>
    %62 = arith.mulf %42, %61 : vector<7x128xf32>
    %c0_19 = arith.constant 0 : index
    %c0_20 = arith.constant 0 : index
    %63 = vector.load %arg5[%c0_19, %c0_20] : memref<7x128xf32, #tpu.memory_space<vmem>>, vector<7x128xf32>
    tpu.vector_store %arg5[%c0_19, %c0_20], %62 {strides = array<i32>} : memref<7x128xf32, #tpu.memory_space<vmem>>, vector<7x128xf32>,
    %cst_21 = arith.constant dense<0.000000e+00> : vector<128xf32>
    %64 = vector.multi_reduction <add>, %62, %cst_21 [0] : vector<7x128xf32> to vector<128xf32>
    %65 = vector.shape_cast %64 : vector<128xf32> to vector<1x128xf32>
    %66 = vector.shape_cast %62 : vector<7x128xf32> to vector<1x7x128xf32>
    %67 = vector.broadcast %66 : vector<1x7x128xf32> to vector<3x7x128xf32>
    %68 = arith.mulf %67, %10 : vector<3x7x128xf32>
    %cst_22 = arith.constant dense<0.000000e+00> : vector<3x128xf32>
    %69 = vector.multi_reduction <add>, %68, %cst_22 [1] : vector<3x7x128xf32> to vector<3x128xf32>
    %70 = arith.mulf %62, %20 : vector<7x128xf32>
    %cst_23 = arith.constant dense<0.000000e+00> : vector<128xf32>
    %71 = vector.multi_reduction <add>, %70, %cst_23 [0] : vector<7x128xf32> to vector<128xf32>
    %72 = vector.shape_cast %71 : vector<128xf32> to vector<1x128xf32>
    %73 = arith.divf %72, %65 : vector<1x128xf32>
    %cst_24 = arith.constant 2.000000e+00 : f32
    %74 = vector.broadcast %cst_24 : f32 to vector<3x128xf32>
    %75 = arith.mulf %69, %74 : vector<3x128xf32>
    %cst_25 = arith.constant 1.000000e+00 : f32
    %76 = vector.broadcast %cst_25 : f32 to vector<3x128xf32>
    %77 = arith.subf %75, %76 : vector<3x128xf32>
    %78 = tpu.concatenate %77, %73 in 0 : vector<3x128xf32>, vector<1x128xf32> -> vector<4x128xf32>
    %c0_26 = arith.constant 0 : index
    %c0_27 = arith.constant 0 : index
    %79 = vector.load %arg4[%c0_26, %c0_27] : memref<4x128xf32, #tpu.memory_space<vmem>>, vector<4x128xf32>
    tpu.vector_store %arg4[%c0_26, %c0_27], %78 {strides = array<i32>} : memref<4x128xf32, #tpu.memory_space<vmem>>, vector<4x128xf32>,
    %cst_28 = arith.constant dense<0x7F800000> : vector<128xf32>
    %80 = vector.multi_reduction <minimumf>, %20, %cst_28 [0] : vector<7x128xf32> to vector<128xf32>
    %81 = vector.shape_cast %80 : vector<128xf32> to vector<1x128xf32>
    %cst_29 = arith.constant dense<0xFF800000> : vector<128xf32>
    %82 = vector.multi_reduction <maximumf>, %20, %cst_29 [0] : vector<7x128xf32> to vector<128xf32>
    %83 = vector.shape_cast %82 : vector<128xf32> to vector<1x128xf32>
    %84 = tpu.concatenate %81, %83 in 0 : vector<1x128xf32>, vector<1x128xf32> -> vector<2x128xf32>
    %c0_30 = arith.constant 0 : index
    %c0_31 = arith.constant 0 : index
    %85 = vector.load %arg6[%c0_30, %c0_31] : memref<2x128xf32, #tpu.memory_space<vmem>>, vector<2x128xf32>
    tpu.vector_store %arg6[%c0_30, %c0_31], %84 {strides = array<i32>} : memref<2x128xf32, #tpu.memory_space<vmem>>, vector<2x128xf32>,
    return
  }
  func.func @transform_0(%arg0: i32) -> (i32, i32, i32) {
    %c0_i32 = arith.constant 0 : i32
    %c0_i32_0 = arith.constant 0 : i32
    %c0_i32_1 = arith.constant 0 : i32
    return %c0_i32, %c0_i32_0, %arg0 : i32, i32, i32
  }
  func.func @transform_1(%arg0: i32) -> (i32, i32) {
    %c0_i32 = arith.constant 0 : i32
    %c0_i32_0 = arith.constant 0 : i32
    return %c0_i32, %arg0 : i32, i32
  }
  func.func @transform_2(%arg0: i32) -> (i32, i32) {
    %c0_i32 = arith.constant 0 : i32
    %c0_i32_0 = arith.constant 0 : i32
    return %c0_i32, %arg0 : i32, i32
  }
  func.func @transform_3(%arg0: i32) -> (i32, i32) {
    %c0_i32 = arith.constant 0 : i32
    %c0_i32_0 = arith.constant 0 : i32
    return %c0_i32, %arg0 : i32, i32
  }
  func.func @transform_4(%arg0: i32) -> (i32, i32) {
    %c0_i32 = arith.constant 0 : i32
    %c0_i32_0 = arith.constant 0 : i32
    return %c0_i32, %arg0 : i32, i32
  }
  func.func @transform_5(%arg0: i32) -> (i32, i32) {
    %c0_i32 = arith.constant 0 : i32
    %c0_i32_0 = arith.constant 0 : i32
    return %c0_i32, %arg0 : i32, i32
  }
}

</mosaic_0001>

<bundles_post_ra>
// kernel: integrator_forward_native.1
= control target key start
LH: loop header
LB: loop body
LE: loop exit
PB: predicated region body
PF: predicated region fallthrough
CT: control target
= control target key end

     0   :  { %s1278_s0 = inlined_call_operand.hbm [shape: f32[3,8,256], index: 0, kind: input, shape index: {}]   ;;  %s1279_s1 = inlined_call_operand.hbm [shape: f32[8,256], index: 1, kind: input, shape index: {}]   ;;  %s1280_s2 = inlined_call_operand.hbm [shape: f32[8,256], index: 2, kind: input, shape index: {}]   ;;  %s1281_s3 = inlined_call_operand.vmem [shape: f32[4,256], index: 3, kind: output, shape index: {0}]   ;;  %s1282_s4 = inlined_call_operand.hbm [shape: f32[7,256], index: 4, kind: output, shape index: {1}]   ;;  %s1283_s5 = inlined_call_operand.vmem [shape: f32[2,256], index: 5, kind: output, shape index: {2}]  }
   0x1   :  { %1291 = sst [smem:[#allocation15_spill]] %s1278_s0 }
   0x2   :  { %1292 = sst [smem:[#allocation16_spill]] %s1279_s1 }
   0x3   :  { %11 = vsyncpa [#allocation3], 0 }
   0x4   :  { %13 = vsyncpa [#allocation3 + $0x1], 0 }
   0x5   :  { %14 = vsyncpa [#allocation6], 0 }
   0x6   :  { %16 = vsyncpa [#allocation6 + $0x1], 0 }
   0x7   :  { %17 = vsyncpa [#allocation4], 0 }
   0x8   :  { %19 = vsyncpa [#allocation4 + $0x1], 0  ;;  %s1001_s18 = smov 0   ;;  %s1003_s19 = smov 0  }
   0x9   :  { %s1005_s20 = smov 0   ;;  %s1007_s21 = smov 0  }
   0xa LB: > { %1293 = sst [smem:[#allocation12_spill]] %s958_s20  ;;  %s1022_s22 = sadd.s32 4294967295, %s962_s21   ;;  %s962_s21 = sphi %s1007_s21, %s1313_s21   ;;  %s958_s20 = sphi %s1005_s20, %s1315_s20   ;;  %s954_s19 = sphi %s1003_s19, %s1317_s19   ;;  %s950_s18 = sphi %s1001_s18, %s1316_s18  }
   0xb   : > { %s711_s23 = sadd.s32 4294967294, %s962_s21   ;;  %s1026_s24 = sadd.s32 1, %s962_s21  }
   0xc   : > { %1294 = sst [smem:[#allocation13_spill]] %s1026_s24  ;;  %s32_s25 = sadd.s32 1, %s958_s20 }
   0xd   : > { %s29_s26 = ssub.s32 %s962_s21, %s1026_s24  ;;  %p39_p0 = scmp.ne.s32.totalorder %s958_s20, %s954_s19 }
   0xe   : > { %p30_p1 = scmp.eq.s32.totalorder %s29_s26, 0  ;;  %p40_p2 = scmp.eq.s32.totalorder %s962_s21, 0 }
   0xf   : > { %p45_p3 = scmp.ne.s32.totalorder %s954_s19, %s950_s18  ;;  %p46_p4 = scmp.eq.s32.totalorder %s1022_s22, 0 }
  0x10   : > { %s1038_s27 = scalar_select %p30_p1, %s958_s20, %s32_s25  }
  0x11   : > { %p41_p5 = por %p40_p2, %p39_p0  ;;  %p1040_p6 = por %p46_p4, %p45_p3 }
  0x12   : > { %1295 = sst [smem:[#allocation14_spill]] %s1038_s27  ;;  %p147_p7 = scmp.eq.s32.totalorder %s1022_s22, 1 }
  0x13   : > { %s1296_s28 = scalar_select %p1040_p6, 1, 0 }
  0x14   : > { %p153_p8 = scmp.eq.s32.totalorder %s711_s23, 1  ;;  %p757_p10 = scmp.lt.s32.totalorder %s962_s21, 2 }
  0x15   : > { %p1047_p11 = por %p147_p7, %p39_p0  ;;  %s1056_s6 = sand.u32 1, %s958_s20  }
  0x16   : > { %p1051_p12 = por %p153_p8, %p45_p3  ;;  %s1059_s7 = sshll.u32 %s962_s21, 7 }
  0x17   : > { %s1297_s29 = scalar_select %p1047_p11, 1, 0 }
  0x18   : > { %s1298_s30 = scalar_select %p1051_p12, 1, 0 }
  0x19   : > { %s733_s8 = smul.u32 24, %s1056_s6  ;;  %s1299_s0 = sld [smem:[#allocation15_spill]] }
  0x1a   : > { %p1068_p13 = pnand %p757_p10, %p41_p5  ;;  %s219_s13 = sand.u32 1, %s962_s21  }
  0x1b   : > { %s203_s14 = scalar_lea.vmem [#allocation2], %s733_s8  ;;  %s1284_s16 = sshll.u32 %s1056_s6, 3 }
  0x1c   : > { %s1300_s12 = scalar_select %p1068_p13, 1, 0 }
  0x1d   : > { %s209_s15 = sshll.u32 %s203_s14, 4  ;;  %s1301_s1 = sld [smem:[#allocation16_spill]]  ;;  %s1073_s15 = int_to_ptr.vmem [resolvable:$true] %s209_s15 }
  0x1e   : > { %s223_s26 = scalar_lea.vmem [#allocation5], %s1284_s16  ;;  %s1088_s8 = scalar_lea.sflag [#allocation6], %s219_s13 }
  0x1f   : > { %s1066_s11 = scalar_lea.hbm %s1299_s0, %s1059_s7  ;;  %s230_s9 = sshll.u32 %s223_s26, 4  ;;  %s1085_s9 = int_to_ptr.vmem [resolvable:$true] %s230_s9 }
  0x20   : > { %p1094_p3 = pneg %p1068_p13 }
  0x23   : > { %s1080_s25 = scalar_lea.hbm %s1301_s1, %s1059_s7  ;;  %s807_s26 = scalar_lea.hbm %s1301_s1, 256 }
  0x24   : > { %s802_s10 = scalar_lea.hbm %s1080_s25, 128  ;;  %p808_p7 = scmp.lt.u32.totalorder %s1080_s25, %s1301_s1 }
  0x25   : > { %p803_p2 = scmp.ne.s32.totalorder %s1080_s25, %s802_s10  ;;  %p809_p8 = scmp.lt.u32.totalorder %s807_s26, %s802_s10 }
  0x26   : > { %p811_p9 = scmp.lt.u32.totalorder %s802_s10, %s1080_s25 }
  0x27   : > { %p805_p4 = pnand %p1094_p3, %p803_p2  ;;  %p810_p10 = por %p809_p8, %p808_p7 }
  0x29   : > { %p806_p5 = pneg %p805_p4  ;;  %p812_p0 = por %p811_p9, %p810_p10 }
  0x2b   : > { %p813_p1 = pnand %p812_p0, %p806_p5 }
  0x2d   : > { %816 = shalt.err (!%p813_p1)
}
  0x2e   : > { %s817_s13 = scalar_lea.vmem %s1085_s9, 128  ;;  %s964_s17 = smov [#allocation5]  }
  0x2f   : > { %p818_p2 = scmp.ne.s32.totalorder %s1085_s9, %s817_s13  ;;  %s822_s23 = sshll.u32 %s964_s17, 4  ;;  %s823_s23 = int_to_ptr.vmem [resolvable:$false] %s822_s23 }
  0x30   : > { %s824_s27 = scalar_lea.vmem %s823_s23, 256  ;;  %p825_p11 = scmp.lt.s32.totalorder %s1085_s9, %s823_s23 }
  0x31   : > { %p820_p4 = pnand %p818_p2, %p1094_p3  ;;  %p826_p6 = scmp.lt.s32.totalorder %s824_s27, %s817_s13 }
  0x33   : > { %p821_p12 = pneg %p820_p4  ;;  %p827_p7 = por %p826_p6, %p825_p11 }
  0x35   : > { %p828_p8 = pnand %p827_p7, %p821_p12 }
  0x37   : > { %831 = shalt.err (!%p828_p8)
}
  0x38   : > { %749 = dma.hbm_to_vmem [thread:$0]  (!%p1068_p13), %s1080_s25, 128, %s1085_s9, %s1088_s8  }
  0x39   : > { %p1303_p9 = scmp.lt.s32.totalorder %s962_s21, 3  ;;  %p1304_p0 = scmp.ge.s32.totalorder %s962_s21, 1 }
  0x3a   : > { %s200_s10 = scalar_lea.sflag [#allocation3], %s1056_s6  ;;  %s832_s26 = scalar_lea.hbm %s1066_s11, 384 }
  0x3b   : > { %p1122_p1 = pnand %p1304_p0, %p1303_p9  ;;  %p833_p6 = scmp.ne.s32.totalorder %s1066_s11, %s832_s26 }
  0x3c   : > { %s837_s23 = scalar_lea.hbm %s1299_s0, 768  ;;  %p838_p5 = scmp.lt.u32.totalorder %s1066_s11, %s1299_s0 }
  0x3d   : > { %s1305_s16 = scalar_select %p1122_p1, 1, 0 }
  0x3e   : > { %p835_p11 = pnand %p833_p6, %p1094_p3  ;;  %p839_p10 = scmp.lt.u32.totalorder %s837_s23, %s832_s26 }
  0x3f   : > { %p841_p4 = scmp.lt.u32.totalorder %s832_s26, %s1066_s11 }
  0x40   : > { %p836_p12 = pneg %p835_p11  ;;  %p840_p2 = por %p839_p10, %p838_p5 }
  0x42   : > { %p842_p7 = por %p841_p4, %p840_p2 }
  0x44   : > { %p843_p8 = pnand %p842_p7, %p836_p12 }
  0x46   : > { %846 = shalt.err (!%p843_p8)
}
  0x47   : > { %s847_s25 = scalar_lea.vmem %s1073_s15, 384  ;;  %s965_s9 = smov [#allocation2]  }
  0x48   : > { %p848_p9 = scmp.ne.s32.totalorder %s1073_s15, %s847_s25  ;;  %s852_s13 = sshll.u32 %s965_s9, 4  ;;  %s853_s13 = int_to_ptr.vmem [resolvable:$false] %s852_s13 }
  0x49   : > { %s854_s1 = scalar_lea.vmem %s853_s13, 768  ;;  %p855_p11 = scmp.lt.s32.totalorder %s1073_s15, %s853_s13 }
  0x4a   : > { %p850_p0 = pnand %p848_p9, %p1094_p3  ;;  %p856_p1 = scmp.lt.s32.totalorder %s854_s1, %s847_s25 }
  0x4c   : > { %p851_p6 = pneg %p850_p0  ;;  %p857_p5 = por %p856_p1, %p855_p11 }
  0x4e   : > { %p858_p10 = pnand %p857_p5, %p851_p6 }
  0x50   : > { %861 = shalt.err (!%p858_p10)
}
  0x51   : > { %s966_s26 = smov 256   ;;  %s967_s17 = smov 128  }
  0x52   : > { %s968_s23 = smov 8   ;;  %s1154_s25 = scalar_lea.hbm %s1280_s2, %s1059_s7 }
  0x53   : > { %746 = dma.hbm_to_vmem [thread:$0]  (!%p1068_p13), %s1066_s11, 384, %s1073_s15, %s200_s10, %s966_s26, %s967_s17, %s968_s23  }
  0x54   : > { %s1306_s13 = sshll.u32 %s1056_s6, 3  ;;  %s862_s20 = scalar_lea.hbm %s1154_s25, 128 }
  0x55   : > { %s241_s1 = scalar_lea.vmem [#allocation7], %s1306_s13  ;;  %p863_p1 = scmp.ne.s32.totalorder %s1154_s25, %s862_s20 }
  0x56   : > { %s248_s0 = sshll.u32 %s241_s1, 4  ;;  %s867_s15 = scalar_lea.hbm %s1280_s2, 256  ;;  %s249_s0 = int_to_ptr.vmem [resolvable:$true] %s248_s0 }
  0x57   : > { %p865_p12 = pnand %p863_p1, %p1094_p3  ;;  %p868_p4 = scmp.lt.u32.totalorder %s1154_s25, %s1280_s2 }
  0x58   : > { %p869_p7 = scmp.lt.u32.totalorder %s867_s15, %s862_s20  ;;  %p871_p9 = scmp.lt.u32.totalorder %s862_s20, %s1154_s25 }
  0x59   : > { %p866_p2 = pneg %p865_p12 }
  0x5a   : > { %p870_p8 = por %p869_p7, %p868_p4 }
  0x5c   : > { %p872_p0 = por %p871_p9, %p870_p8 }
  0x5e   : > { %p873_p6 = pnand %p872_p0, %p866_p2 }
  0x60   : > { %876 = shalt.err (!%p873_p6)
}
  0x61   : > { %s877_s6 = scalar_lea.vmem %s249_s0, 128  ;;  %s969_s26 = smov [#allocation7]  }
  0x62   : > { %p878_p11 = scmp.ne.s32.totalorder %s249_s0, %s877_s6  ;;  %s882_s17 = sshll.u32 %s969_s26, 4  ;;  %s883_s17 = int_to_ptr.vmem [resolvable:$false] %s882_s17 }
  0x63   : > { %s884_s24 = scalar_lea.vmem %s883_s17, 256  ;;  %p885_p1 = scmp.lt.s32.totalorder %s249_s0, %s883_s17 }
  0x64   : > { %p880_p5 = pnand %p878_p11, %p1094_p3  ;;  %p886_p12 = scmp.lt.s32.totalorder %s884_s24, %s877_s6 }
  0x66   : > { %p881_p10 = pneg %p880_p5  ;;  %p887_p13 = por %p886_p12, %p885_p1 }
  0x68   : > { %p888_p4 = pnand %p887_p13, %p881_p10 }
  0x6a   : > { %891 = shalt.err (!%p888_p4)
}
  0x6b   : > { %p1307_p7 = scmp.ne.s32.totalorder %s1300_s12, 0  ;;  %p1308_p2 = scmp.ne.s32.totalorder %s1305_s16, 0 }
  0x6c   : > { %s1179_s20 = sand.u32 (!%p1308_p2), 1, %s954_s19   ;;  %p1309_p13 = scmp.ne.s32.totalorder (!%p1308_p2), %s1296_s28, 0 }
  0x6d   : > { %752 = dma.hbm_to_vmem [thread:$0]  (!%p1307_p7), %s1154_s25, 128, %s249_s0, %s1088_s8  }
  0x6e   : > { %257 = sbr.rel (%p1308_p2) target bundleno = 251 (0xfb), region = 32  ;;  %s260_s23 = scalar_lea.sflag (!%p1308_p2), [#allocation3], %s1179_s20 }
  0x6f   : > { %s734_s14 = smul.u32 (!%p1308_p2), 24, %s1179_s20 }
  0x71   : > { %s1183_s27 = scalar_lea.vmem (!%p1308_p2), [#allocation2], %s734_s14 }
  0x75   : > { %937 = dma.done.wait (%p1309_p13), %s260_s23, 384  }
  0x76   : > { %939 = vsyncadd (%p1309_p13), %s260_s23, 4294966912  ;;  %s268_s0 = sand.u32 1, %s1022_s22   ;;  %s1191_s12 = sshll.u32 %s1179_s20, 3 }
  0x77   : > { %s269_s8 = scalar_lea.sflag [#allocation6], %s268_s0  ;;  %s272_s16 = scalar_lea.vmem [#allocation5], %s1191_s12 }
  0x78   : > { %941 = dma.done.wait (%p1309_p13), %s269_s8, 256  }
  0x79   : > { %943 = vsyncadd (%p1309_p13), %s269_s8, 4294967040  ;;  %s281_s9 = scalar_lea.vmem [#allocation7], %s1191_s12  ;;  %v335_v1 = vld [vmem:[%s272_s16] sm:$0xff]  ;;  %vm423_vm0 = vcmask 1046528   ;;  %p326_p3 = scmp.lt.s32.totalorder %s1022_s22, 1  ;;  %vm396_vm1 = vcmask 1040384  }
  0x7a   : > { %v334_v0 = vld [vmem:[%s281_s9] sm:$0xff]  ;;  %v359_v2 = vrot.slane %v335_v1, 1  ;;  %v337_v52 = vld [vmem:[%s1183_s27 + $0x8] sm:$0xff]  ;;  %vm406_vm4 = vcmask 1041408   ;;  %vm412_vm5 = vcmask 1043456   ;;  %s319_s15 = scalar_lea.vmem [#allocation8], %s1191_s12 }
  0x7b   : > { %v363_v3 = vrot.slane %v334_v0, 1  ;;  %s1207_s28 = scalar_select %p326_p3, %s1022_s22, 1  ;;  %v340_v32 = vrot.slane %v334_v0, 7  ;;  %v336_v51 = vld [vmem:[%s1183_s27] sm:$0xff]  ;;  %v338_v53 = vld [vmem:[%s1183_s27 + $0x10] sm:$0xff]  ;;  %v347_v57 = vrot.slane %v337_v52, 1 }
  0x7c   : > { %v361_v4 = vadd.f32 %v359_v2, %v335_v1  ;;  %v346_v56 = vrot.slane %v336_v51, 1  ;;  %v348_v58 = vrot.slane %v338_v53, 1  ;;  %s547_s10 = sshll.u32 %s319_s15, 4  ;;  %s730_s7 = sshll.u32 %s1022_s22, 7  ;;  %s1221_s10 = int_to_ptr.vmem [resolvable:$true] %s547_s10 }
  0x7d   : > { %v365_v5 = vadd.f32 %v363_v3, %v334_v0  ;;  %s724_s25 = sshll.u32 %s1207_s28, 1  ;;  %v342_v36 = vsub.f32 %v334_v0, %v340_v32  ;;  %v353_v62 = vadd.f32 %v347_v57, %v337_v52  ;;  %s1227_s17 = scalar_lea.hbm %s1282_s4, %s730_s7 }
  0x7e   : > { %v362_v6 = vmul.f32 0.5, %v361_v4  ;;  %s333_s11 = scalar_lea.vmem %s1283_s5, %s724_s25  ;;  %v352_v61 = vadd.f32 %v346_v56, %v336_v51  ;;  %v354_v63 = vadd.f32 %v348_v58, %v338_v53  ;;  %s527_s22 = scalar_lea.sflag [#allocation4], %s1179_s20 }
  0x7f   : > { %v1199_v7 = vmul.f32 0.5, %v365_v5  ;;  %v386_v40 = vsub.f32 0.0, %v342_v36  ;;  %v356_v3 = vmul.f32 0.5, %v353_v62  ;;  %s892_s24 = scalar_lea.vmem %s1221_s10, 128  ;;  %p1310_p9 = scmp.ne.s32.totalorder %s1297_s29, 0 }
  0x80   : > { %v725_v8 = vadd.f32 -1.0, %v362_v6  ;;  %v355_v2 = vmul.f32 0.5, %v352_v61  ;;  %v357_v4 = vmul.f32 0.5, %v354_v63  ;;  %p893_p8 = scmp.ne.s32.totalorder %s1221_s10, %s892_s24  ;;  %s970_s14 = smov [#allocation8]  }
  0x81   : > { %v506_v9 = vsel %vm423_vm0, %v1199_v7, inf  ;;  %v513_v11 = vsel %vm423_vm0, %v1199_v7, -inf  ;;  %s896_s23 = sshll.u32 %s970_s14, 4  ;;  %s897_s23 = int_to_ptr.vmem [resolvable:$false] %s896_s23 }
  0x82   : > { %v507_v10 = vrot.slane %v506_v9, 4  ;;  %v371_v12 = vand.u32 2147483647, %v725_v8  ;;  %v514_v13 = vrot.slane %v513_v11, 4  ;;  %v368_v35 = vmax.f32 %v725_v8, 0.0  ;;  %p894_p0 = pnand %p893_p8, %p1310_p9  ;;  %s898_s27 = scalar_lea.vmem %s897_s23, 256 }
  0x83   : > { %vm369_vm3 = vcmp.ne.f32.partialorder %v725_v8, %v725_v8  ;;  %p899_p11 = scmp.lt.s32.totalorder %s1221_s10, %s897_s23  ;;  %p900_p5 = scmp.lt.s32.totalorder %s898_s27, %s892_s24 }
  0x84   : > { %v508_v14 = vmin.f32 %v506_v9, %v507_v10  ;;  %v372_v15 = vsub.f32 0.0, %v371_v12  ;;  %v515_v16 = vmax.f32 %v513_v11, %v514_v13  ;;  %v434_v9 = vrot.slane %v355_v2, 7  ;;  %p895_p6 = pneg %p894_p0 }
  0x85   : > { %v435_v10 = vrot.slane %v356_v3, 7  ;;  %v436_v11 = vrot.slane %v357_v4, 7  ;;  %v474_v12 = vrot.slane %v1199_v7, 7  ;;  %p901_p10 = por %p900_p5, %p899_p11 }
  0x86   : > { %v509_v17 = vrot.slane %v508_v14, 2  ;;  %v373_v18 = vmul.f32 1.442695, %v372_v15  ;;  %v516_v19 = vrot.slane %v515_v16, 2 }
  0x87   : > { %p902_p1 = pnand %p901_p10, %p895_p6 }
  0x88   : > { %v510_v20 = vmin.f32 %v508_v14, %v509_v17  ;;  %794 = vpow2.f32 %v373_v18  ;;  %v517_v21 = vmax.f32 %v515_v16, %v516_v19 }
  0x8a   : > { %v511_v22 = vrot.slane %v510_v20, 1  ;;  %v518_v23 = vrot.slane %v517_v21, 1 }
  0x8c   : > { %v512_v24 = vmin.f32 %v510_v20, %v511_v22  ;;  %v519_v25 = vmax.f32 %v517_v21, %v518_v23 }
  0x8e   : > { %v520_v26 = vsel %vm396_vm1, %v512_v24, %v519_v25 }
  0x8f   : > { %521 = vst [vmem:[%s333_s11] sm:$0x3] %v520_v26 }
  0x92   : > { %v795_v27 = vpop.eup %794 }
  0x93   : > { %v375_v28 = vadd.f32 1.0, %v795_v27  ;;  %v378_v29 = vmul.f32 -0.5, %v795_v27  ;;  %v381_v31 = vand.u32 2147483647, %v795_v27 }
  0x95   : > { %796 = vlog2.f32 %v375_v28  ;;  %v379_v30 = vadd.f32 1.0, %v378_v29  ;;  %vm382_vm2 = vcmp.lt.f32.partialorder %v381_v31, 0.0004427343 }
  0x97   : > { %v380_v33 = vmul.f32 %v795_v27, %v379_v30 }
  0x9f   : > { %v797_v34 = vpop.eup %796 }
  0xa0   : > { %v377_v37 = vmul.f32 0.6931472, %v797_v34 }
  0xa2   : > { %v383_v38 = vsel %vm382_vm2, %v380_v33, %v377_v37 }
  0xa3   : > { %v384_v39 = vadd.f32 %v383_v38, %v368_v35 }
  0xa5   : > { %v385_v41 = vsel %vm369_vm3, %v725_v8, %v384_v39 }
  0xa6   : > { %v388_v42 = vrot.slane %v385_v41, 7 }
  0xa8   : > { %v390_v43 = vmul.f32 %v388_v42, %v386_v40 }
  0xaa   : > { %v391_v44 = vmul.f32 1.442695, %v390_v43 }
  0xac   : > { %798 = vpow2.f32 %v391_v44 }
  0xb6   : > { %v799_v45 = vpop.eup %798 }
  0xb7   : > { %v393_v46 = vsub.f32 1.0, %v799_v45 }
  0xb9   : > { %v394_v47 = vsub.f32 1.0, %v393_v46 }
  0xbb   : > { %v395_v48 = vadd.f32 1e-10, %v394_v47 }
  0xbd   : > { %v397_v49 = vsel %vm396_vm1, 1.0, %v395_v48 }
  0xbe   : > { %v399_v50 = vrot.slane %v397_v49, 7 }
  0xc0   : > { %v401_v54 = vsel %vm396_vm1, 1.0, %v399_v50 }
  0xc1   : > { %v402_v55 = vmul.f32 %v401_v54, %v397_v49 }
  0xc3   : > { %v404_v59 = vrot.slane %v402_v55, 6 }
  0xc5   : > { %v407_v60 = vsel %vm406_vm4, 1.0, %v404_v59 }
  0xc6   : > { %v408_v0 = vmul.f32 %v407_v60, %v402_v55 }
  0xc8   : > { %v410_v1 = vrot.slane %v408_v0, 4 }
  0xca   : > { %v413_v5 = vsel %vm412_vm5, 1.0, %v410_v1 }
  0xcb   : > { %v414_v6 = vmul.f32 %v413_v5, %v408_v0 }
  0xcd   : > { %v416_v8 = vrot.slane %v414_v6, 7 }
  0xcf   : > { %v418_v13 = vmul.f32 %v416_v8, %v393_v46 }
  0xd1   : > { %419 = vst [vmem:[%s319_s15 - $0x1] sm:$0xfe] %v418_v13  ;;  %v421_v14 = vrot.slane %v418_v13, 1  ;;  %v440_v15 = vmul.f32 %v434_v9, %v418_v13  ;;  %v441_v16 = vmul.f32 %v435_v10, %v418_v13  ;;  %v442_v17 = vmul.f32 %v436_v11, %v418_v13 }
  0xd2   : > { %v476_v18 = vmul.f32 %v474_v12, %v418_v13 }
  0xd3   : > { %905 = shalt.err (!%p902_p1)
}
  0xd4   : > { %s906_s20 = scalar_lea.hbm %s1227_s17, 128  ;;  %s910_s8 = scalar_lea.hbm %s1282_s4, 256 }
  0xd5   : > { %p907_p12 = scmp.ne.s32.totalorder %s1227_s17, %s906_s20  ;;  %p911_p2 = scmp.lt.u32.totalorder %s1227_s17, %s1282_s4 }
  0xd6   : > { %p912_p13 = scmp.lt.u32.totalorder %s910_s8, %s906_s20  ;;  %p914_p8 = scmp.lt.u32.totalorder %s906_s20, %s1227_s17 }
  0xd7   : > { %p908_p4 = pnand %p907_p12, %p1310_p9 }
  0xd8   : > { %p913_p3 = por %p912_p13, %p911_p2 }
  0xd9   : > { %p909_p7 = pneg %p908_p4 }
  0xda   : > { %p915_p0 = por %p914_p8, %p913_p3 }
  0xdc   : > { %p916_p6 = pnand %p915_p0, %p909_p7 }
  0xde   : > { %919 = shalt.err (!%p916_p6)
}
  0xdf   : > { %741 = dma.vmem_to_hbm [thread:$0]  (%p1310_p9), %s1221_s10, 128, %s1227_s17, %s527_s22   ;;  %v424_v7 = vsel %vm423_vm0, %v421_v14, 0.0  ;;  %v446_v19 = vrot.slane %v440_v15, 1  ;;  %v447_v20 = vrot.slane %v441_v16, 1  ;;  %v448_v21 = vrot.slane %v442_v17, 1 }
  0xe0   : > { %v425_v22 = vrot.slane %v424_v7, 4  ;;  %v478_v23 = vrot.slane %v476_v18, 1  ;;  %vm498_vm6 = vcmask 1041409   ;;  %vm500_vm7 = vcmask 1042434   ;;  %s723_s29 = sshll.u32 %s1207_s28, 2 }
  0xe1   : > { %v452_v24 = vsel %vm423_vm0, %v446_v19, 0.0  ;;  %v459_v25 = vsel %vm423_vm0, %v447_v20, 0.0  ;;  %v466_v26 = vsel %vm423_vm0, %v448_v21, 0.0  ;;  %vm503_vm8 = vcmask 1042432   ;;  %s329_s1 = scalar_lea.vmem %s1281_s3, %s723_s29 }
  0xe2   : > { %v426_v27 = vadd.f32 %v425_v22, %v424_v7  ;;  %v453_v28 = vrot.slane %v452_v24, 4  ;;  %v460_v29 = vrot.slane %v459_v25, 4  ;;  %v467_v30 = vrot.slane %v466_v26, 4 }
  0xe3   : > { %v480_v31 = vsel %vm423_vm0, %v478_v23, 0.0 }
  0xe4   : > { %v427_v32 = vrot.slane %v426_v27, 2  ;;  %v454_v33 = vadd.f32 %v453_v28, %v452_v24  ;;  %v461_v34 = vadd.f32 %v460_v29, %v459_v25  ;;  %v468_v35 = vadd.f32 %v467_v30, %v466_v26 }
  0xe5   : > { %v481_v36 = vrot.slane %v480_v31, 4 }
  0xe6   : > { %v428_v37 = vadd.f32 %v427_v32, %v426_v27  ;;  %v455_v38 = vrot.slane %v454_v33, 2  ;;  %v462_v39 = vrot.slane %v461_v34, 2  ;;  %v469_v40 = vrot.slane %v468_v35, 2 }
  0xe7   : > { %v482_v41 = vadd.f32 %v481_v36, %v480_v31 }
  0xe8   : > { %v429_v42 = vrot.slane %v428_v37, 1  ;;  %v456_v43 = vadd.f32 %v455_v38, %v454_v33  ;;  %v463_v44 = vadd.f32 %v462_v39, %v461_v34  ;;  %v470_v45 = vadd.f32 %v469_v40, %v468_v35 }
  0xe9   : > { %v483_v46 = vrot.slane %v482_v41, 2 }
  0xea   : > { %v430_v47 = vadd.f32 %v429_v42, %v428_v37  ;;  %v457_v48 = vrot.slane %v456_v43, 1  ;;  %v464_v49 = vrot.slane %v463_v44, 1  ;;  %v471_v50 = vrot.slane %v470_v45, 1 }
  0xeb   : > { %v484_v51 = vadd.f32 %v483_v46, %v482_v41 }
  0xec   : > { %v458_v52 = vadd.f32 %v457_v48, %v456_v43  ;;  %v465_v53 = vadd.f32 %v464_v49, %v463_v44  ;;  %v472_v54 = vadd.f32 %v471_v50, %v470_v45  ;;  %800 = vrcp.f32 %v430_v47 }
  0xed   : > { %v485_v58 = vrot.slane %v484_v51, 1 }
  0xee   : > { %v489_v55 = vmul.f32 2.0, %v458_v52  ;;  %v490_v56 = vmul.f32 2.0, %v465_v53  ;;  %v491_v57 = vmul.f32 2.0, %v472_v54 }
  0xef   : > { %v486_v62 = vadd.f32 %v485_v58, %v484_v51 }
  0xf0   : > { %v726_v59 = vadd.f32 -1.0, %v489_v55  ;;  %v727_v60 = vadd.f32 -1.0, %v490_v56  ;;  %v728_v61 = vadd.f32 -1.0, %v491_v57 }
  0xf2   : > { %v499_v63 = vsel %vm498_vm6, %v727_v60, %v726_v59 }
  0xf3   : > { %v501_v1 = vsel %vm500_vm7, %v728_v61, %v499_v63 }
  0xf6   : > { %v801_v0 = vpop.eup %800 }
  0xf7   : > { %v488_v2 = vmul.f32 %v801_v0, %v486_v62 }
  0xf9   : > { %v504_v3 = vsel %vm503_vm8, %v501_v1, %v488_v2 }
  0xfa   : > { %505 = vst [vmem:[%s329_s1] sm:$0xf] %v504_v3 }
  0xfb PF: > { %s569_s11 = sand.u32 1, %s950_s18   ;;  %p1311_p9 = scmp.ne.s32.totalorder %s1298_s30, 0 }
  0xfc   : > { %p1312_p11 = scmp.ge.s32.totalorder %s962_s21, 2  ;;  %s570_s15 = scalar_lea.sflag [#allocation4], %s569_s11 }
  0xfe   : > { %p754_p5 = pnand %p1312_p11, %p1311_p9 }
 0x100   : > { %945 = dma.done.wait (!%p754_p5), %s570_s15, 128  }
 0x101   : > { %947 = vsyncadd (!%p754_p5), %s570_s15, 4294967168  ;;  %s1313_s21 = sld [smem:[#allocation13_spill]]  ;;  %s1314_s28 = sld [smem:[#allocation12_spill]] }
 0x102   : > { %s1315_s20 = sld [smem:[#allocation14_spill]]  ;;  %s1316_s18 = smov %s954_s19 }
 0x107   : > { %p22_p10 = scmp.ge.s32.totalorder %s1313_s21, 4   ;;  %s1317_s19 = smov %s1314_s28 }
 0x109   :  { %24 = sbr.rel (!%p22_p10) target bundleno = 10 (0xa), region = 125 }
 0x110   :  { %582 = vsyncpa [#allocation3], 1 }
 0x111   :  { %584 = vsyncpa [#allocation3 + $0x1], 1 }
 0x112   :  { %585 = vsyncpa [#allocation6], 1 }
 0x113   :  { %587 = vsyncpa [#allocation6 + $0x1], 1 }
 0x114   :  { %588 = vsyncpa [#allocation4], 1 }
 0x115   :  { %590 = vsyncpa [#allocation4 + $0x1], 1 }

</bundles_post_ra>
